<compile_context>
chip_gen: v5e
topology: v5e:2x2
jax: 0.10.0
libtpu: 0.0.40
codegen_flags: <defaults>
</compile_context>

<pallas_src>
import functools

import jax
import jax.numpy as jnp
import numpy as np
from jax.experimental import pallas as pl
from jax.experimental.pallas import tpu as pltpu

LN_EPS = 1e-5  # torch.nn.LayerNorm default eps


def _layernorm_fp32(x):
    # Fp32LayerNorm(bias=False, elementwise_affine=False): stats in f32, no affine.
    x32 = x.astype(jnp.float32)
    mu = jnp.mean(x32, axis=-1, keepdims=True)
    var = jnp.mean(jnp.square(x32 - mu), axis=-1, keepdims=True)
    return (x32 - mu) * jax.lax.rsqrt(var + LN_EPS)


def _gelu_exact(x):
    # PyTorch nn.GELU() default (erf variant).
    return 0.5 * x * (1.0 + jax.lax.erf(x * 0.7071067811865476))


# --------------- kernel 1: fused LN1 + Q/K/V projection (scale folded into Q) -------------
def _ln_qkv_kernel(x_ref, wq_ref, wk_ref, wv_ref, q_ref, k_ref, v_ref, *, attn_scale):
    h = _layernorm_fp32(x_ref[0]).astype(jnp.bfloat16)                 # (tq, D) bf16
    q = jnp.dot(h, wq_ref[...], preferred_element_type=jnp.float32) * attn_scale
    k = jnp.dot(h, wk_ref[...], preferred_element_type=jnp.float32)
    v = jnp.dot(h, wv_ref[...], preferred_element_type=jnp.float32)
    q_ref[0] = q.astype(q_ref.dtype)
    k_ref[0] = k.astype(k_ref.dtype)
    v_ref[0] = v.astype(v_ref.dtype)


# --------- kernel 2: flash attention (online softmax over KV tiles) + proj + MLP ----------
def _flash_attn_mlp_kernel(x_ref, q_ref, k_ref, v_ref, wproj_ref, wfc1_ref, wfc2_ref,
                           out_ref, m_sc, l_sc, acc_sc):
    j = pl.program_id(2)

    @pl.when(j == 0)
    def _():
        m_sc[...] = jnp.full(m_sc.shape, -jnp.inf, jnp.float32)
        l_sc[...] = jnp.zeros(l_sc.shape, jnp.float32)
        acc_sc[...] = jnp.zeros(acc_sc.shape, jnp.float32)

    q = q_ref[0]                       # (H, tq,  hd) bf16, already scaled by 1/head_dim
    k = k_ref[0]                       # (H, tkv, hd) bf16
    v = v_ref[0]                       # (H, tkv, hd) bf16

    # batched over heads; f32 accumulation on the MXU
    s = jnp.einsum("hqd,hkd->hqk", q, k, preferred_element_type=jnp.float32)
    m_prev = m_sc[...]
    m_new = jnp.maximum(m_prev, jnp.max(s, axis=-1, keepdims=True))
    alpha = jnp.exp(m_prev - m_new)
    p = jnp.exp(s - m_new)
    l_sc[...] = alpha * l_sc[...] + jnp.sum(p, axis=-1, keepdims=True)
    acc_sc[...] = alpha * acc_sc[...] + jnp.einsum(
        "hqk,hkd->hqd", p.astype(v.dtype), v, preferred_element_type=jnp.float32)
    m_sc[...] = m_new

    @pl.when(j == pl.num_programs(2) - 1)
    def _():
        # normalize (EUP approx reciprocal), per-head output projection, residual,
        # LN2 + MLP, second residual.
        attn = (acc_sc[...] * pl.reciprocal(l_sc[...], approx=True)).astype(jnp.bfloat16)
        # wproj_ref holds W_proj reshaped to (H, hd, D): summing the per-head batched
        # matmul over heads merges them without an in-kernel transpose/concatenate.
        attn_out = jnp.sum(
            jnp.einsum("hqe,hed->hqd", attn, wproj_ref[...],
                       preferred_element_type=jnp.float32),
            axis=0)                                                    # (tq, D) f32
        x1 = x_ref[0].astype(jnp.float32) + attn_out
        h2 = _layernorm_fp32(x1).astype(jnp.bfloat16)
        h2 = jnp.dot(h2, wfc1_ref[...], preferred_element_type=jnp.float32)
        h2 = _gelu_exact(h2).astype(jnp.bfloat16)
        h2 = jnp.dot(h2, wfc2_ref[...], preferred_element_type=jnp.float32)
        out_ref[0] = (x1 + h2).astype(out_ref.dtype)


def _vmem_limit(estimate_bytes):
    # Raise the scoped VMEM budget above the default, with headroom, but stay safely
    # below v7x's 64 MiB physical VMEM (also fine on v5e/v6e's 128 MiB).
    return int(min(max(4 * estimate_bytes, 32 * 1024 * 1024), 48 * 1024 * 1024))


# ------------------------------------- wrapper --------------------------------------------
def flexblock_forward(x, params, *, num_heads, mup_scale=True, q_tile=None, kv_tile=None):
    B, N, D = x.shape
    H = num_heads
    assert D % H == 0, "dim must be divisible by num_heads"
    hd = D // H
    Hmlp = params["w_fc1"].shape[1]
    attn_scale = (1.0 / hd) if mup_scale else (1.0 / (hd ** 0.5))

    q_tile = q_tile or min(N, 256)
    kv_tile = kv_tile or min(N, 512)
    assert N % q_tile == 0 and N % kv_tile == 0, "sequence length must divide the tiles"

    bf16 = jnp.bfloat16
    w_q = params["w_q"].astype(bf16)
    w_k = params["w_k"].astype(bf16)
    w_v = params["w_v"].astype(bf16)
    w_proj_h = params["w_proj"].astype(bf16).reshape(H, hd, D)   # per-head rows of W_proj
    w_fc1 = params["w_fc1"].astype(bf16)
    w_fc2 = params["w_fc2"].astype(bf16)

    f32b, bf16b = 4, 2

    # ---- kernel 1: LN1 + QKV projection, grid over (batch, sequence tiles) ----
    k1_est = 2 * q_tile * D * (f32b + 3 * bf16b) + 3 * D * D * bf16b
    q, k, v = pl.pallas_call(
        functools.partial(_ln_qkv_kernel, attn_scale=attn_scale),
        out_shape=(jax.ShapeDtypeStruct((B, N, D), bf16),
                   jax.ShapeDtypeStruct((B, N, D), bf16),
                   jax.ShapeDtypeStruct((B, N, D), bf16)),
        grid_spec=pltpu.PrefetchScalarGridSpec(
            num_scalar_prefetch=0,
            grid=(B, N // q_tile),
            in_specs=[
                pl.BlockSpec((1, q_tile, D), lambda b, i: (b, i, 0)),
                pl.BlockSpec((D, D), lambda b, i: (0, 0)),
                pl.BlockSpec((D, D), lambda b, i: (0, 0)),
                pl.BlockSpec((D, D), lambda b, i: (0, 0)),
            ],
            out_specs=[
                pl.BlockSpec((1, q_tile, D), lambda b, i: (b, i, 0)),
                pl.BlockSpec((1, q_tile, D), lambda b, i: (b, i, 0)),
                pl.BlockSpec((1, q_tile, D), lambda b, i: (b, i, 0)),
            ],
        ),
        compiler_params=pltpu.CompilerParams(
            dimension_semantics=("parallel", "parallel"),
            vmem_limit_bytes=_vmem_limit(k1_est)),
    )(x, w_q, w_k, w_v)

    # Head split done once at the XLA level (single bandwidth pass over bf16 q/k/v).
    # TODO(synk): could be fused away by emitting a (B, H, N, hd) layout from kernel 1.
    def split_heads(t):
        return t.reshape(B, N, H, hd).transpose(0, 2, 1, 3)
    q4, k4, v4 = split_heads(q), split_heads(k), split_heads(v)

    # ---- kernel 2: flash attention + output proj + residual + LN2 + MLP + residual ----
    k2_est = (2 * (2 * q_tile * D * f32b
                   + H * q_tile * hd * bf16b
                   + 2 * H * kv_tile * hd * bf16b)
              + (H * hd * D + D * Hmlp + Hmlp * D) * bf16b
              + H * q_tile * (hd + 2) * f32b)
    out = pl.pallas_call(
        _flash_attn_mlp_kernel,
        out_shape=jax.ShapeDtypeStruct((B, N, D), x.dtype),
        grid_spec=pltpu.PrefetchScalarGridSpec(
            num_scalar_prefetch=0,
            grid=(B, N // q_tile, N // kv_tile),
            in_specs=[
                pl.BlockSpec((1, q_tile, D), lambda b, i, j: (b, i, 0)),          # x
                pl.BlockSpec((1, H, q_tile, hd), lambda b, i, j: (b, 0, i, 0)),   # q
                pl.BlockSpec((1, H, kv_tile, hd), lambda b, i, j: (b, 0, j, 0)),  # k
                pl.BlockSpec((1, H, kv_tile, hd), lambda b, i, j: (b, 0, j, 0)),  # v
                pl.BlockSpec((H, hd, D), lambda b, i, j: (0, 0, 0)),              # W_proj (per head)
                pl.BlockSpec((D, Hmlp), lambda b, i, j: (0, 0)),                  # W_fc1
                pl.BlockSpec((Hmlp, D), lambda b, i, j: (0, 0)),                  # W_fc2
            ],
            out_specs=pl.BlockSpec((1, q_tile, D), lambda b, i, j: (b, i, 0)),
            scratch_shapes=[
                pltpu.VMEM((H, q_tile, 1), jnp.float32),    # running max
                pltpu.VMEM((H, q_tile, 1), jnp.float32),    # running denominator
                pltpu.VMEM((H, q_tile, hd), jnp.float32),   # output accumulator
            ],
        ),
        compiler_params=pltpu.CompilerParams(
            dimension_semantics=("parallel", "parallel", "arbitrary"),
            vmem_limit_bytes=_vmem_limit(k2_est)),
        input_output_aliases={0: 0},   # output aliases x (same shape/dtype)
    )(x, q4, k4, v4, w_proj_h, w_fc1, w_fc2)
    return out


# ---------------- pure-JAX reference (f32) for correctness check ----------------
def reference(x, params, *, num_heads, mup_scale=True):
    B, N, D = x.shape
    hd = D // num_heads
    scale = (1.0 / hd) if mup_scale else (1.0 / (hd ** 0.5))
    p = {kk: vv.astype(jnp.float32) for kk, vv in params.items()}

    def ln(t):
        t = t.astype(jnp.float32)
        mu = t.mean(-1, keepdims=True)
        var = ((t - mu) ** 2).mean(-1, keepdims=True)
        return (t - mu) / jnp.sqrt(var + LN_EPS)

    def heads(t):
        return t.reshape(B, N, num_heads, hd).transpose(0, 2, 1, 3)

    h = ln(x)
    q, k, v = heads(h @ p["w_q"]), heads(h @ p["w_k"]), heads(h @ p["w_v"])
    s = jnp.einsum("bhnd,bhmd->bhnm", q, k) * scale
    a = jax.nn.softmax(s, axis=-1)
    o = jnp.einsum("bhnm,bhmd->bhnd", a, v).transpose(0, 2, 1, 3).reshape(B, N, D)
    x1 = x + o @ p["w_proj"]
    mlp = _gelu_exact(ln(x1) @ p["w_fc1"]) @ p["w_fc2"]
    return x1 + mlp


if __name__ == "__main__":
    # small shapes: dim=32, num_heads=2 (head_dim=16), mlp_ratio=4 -> hidden=128,
    # batch=2, seq len N=16, tiled into 8-row q/kv tiles so the flash pipeline and the
    # multi-axis grid are actually exercised. Production should use D / head_dim that are
    # multiples of 128 (lane-dense stores, full MXU) — see notes in the kernel header.
    B, N, D, num_heads = 2, 16, 32, 2
    Hmlp = int(D * 4.0)

    key = jax.random.PRNGKey(0)
    ks = jax.random.split(key, 7)
    x = jax.random.normal(ks[0], (B, N, D), jnp.float32)

    def init_w(kk, shape):
        return ((1.0 / np.sqrt(shape[0])) *
                jax.random.normal(kk, shape, jnp.float32)).astype(jnp.bfloat16)

    params = {
        "w_q": init_w(ks[1], (D, D)),
        "w_k": init_w(ks[2], (D, D)),
        "w_v": init_w(ks[3], (D, D)),
        "w_proj": init_w(ks[4], (D, D)),
        "w_fc1": init_w(ks[5], (D, Hmlp)),
        "w_fc2": init_w(ks[6], (Hmlp, D)),
    }

    ref = reference(x, params, num_heads=num_heads, mup_scale=True)

    out = flexblock_forward(x, params, num_heads=num_heads, mup_scale=True,
                            q_tile=8, kv_tile=8)
    out = jax.block_until_ready(out)

    np.testing.assert_allclose(np.asarray(out, dtype=np.float32), np.asarray(ref),
                               rtol=2e-2, atol=3e-2)
    print("KERNEL_OK")
</pallas_src>

<mosaic_0001>
module attributes {stable_mosaic.version = 11 : i64} {
  func.func @_ln_qkv_kernel(%arg0: i32, %arg1: i32, %arg2: memref<1x8x32xf32, #tpu.memory_space<vmem>>, %arg3: memref<32x32xbf16, #tpu.memory_space<vmem>>, %arg4: memref<32x32xbf16, #tpu.memory_space<vmem>>, %arg5: memref<32x32xbf16, #tpu.memory_space<vmem>>, %arg6: memref<1x8x32xbf16, #tpu.memory_space<vmem>>, %arg7: memref<1x8x32xbf16, #tpu.memory_space<vmem>>, %arg8: memref<1x8x32xbf16, #tpu.memory_space<vmem>>) attributes {dimension_semantics = [#tpu.dimension_semantics<parallel>, #tpu.dimension_semantics<parallel>], iteration_bounds = array<i64: 2, 2>, scalar_prefetch = 0 : i64, scratch_operands = 0 : i64, tpu.core_type = #tpu.core_type<tc>, window_params = [{transform_indices = @transform_0, window_bounds = array<i64: 1, 8, 32>}, {pipeline_mode = #tpu.pipeline_mode<synchronous>, transform_indices = @transform_1, window_bounds = array<i64: 32, 32>}, {pipeline_mode = #tpu.pipeline_mode<synchronous>, transform_indices = @transform_2, window_bounds = array<i64: 32, 32>}, {pipeline_mode = #tpu.pipeline_mode<synchronous>, transform_indices = @transform_3, window_bounds = array<i64: 32, 32>}, {transform_indices = @transform_4, window_bounds = array<i64: 1, 8, 32>}, {transform_indices = @transform_5, window_bounds = array<i64: 1, 8, 32>}, {transform_indices = @transform_6, window_bounds = array<i64: 1, 8, 32>}]} {
    %c0 = arith.constant 0 : index
    %c0_0 = arith.constant 0 : index
    %c0_1 = arith.constant 0 : index
    %0 = vector.load %arg2[%c0, %c0_0, %c0_1] : memref<1x8x32xf32, #tpu.memory_space<vmem>>, vector<1x8x32xf32>
    %1 = vector.shape_cast %0 : vector<1x8x32xf32> to vector<8x32xf32>
    %cst = arith.constant dense<0.000000e+00> : vector<8xf32>
    %2 = vector.multi_reduction <add>, %1, %cst [1] : vector<8x32xf32> to vector<8xf32>
    %3 = vector.shape_cast %2 : vector<8xf32> to vector<8x1xf32>
    %cst_2 = arith.constant 3.200000e+01 : f32
    %4 = vector.broadcast %cst_2 : f32 to vector<8x1xf32>
    %5 = arith.divf %3, %4 : vector<8x1xf32>
    %6 = vector.broadcast %5 : vector<8x1xf32> to vector<8x32xf32>
    %7 = arith.subf %1, %6 : vector<8x32xf32>
    %8 = arith.mulf %7, %7 : vector<8x32xf32>
    %cst_3 = arith.constant dense<0.000000e+00> : vector<8xf32>
    %9 = vector.multi_reduction <add>, %8, %cst_3 [1] : vector<8x32xf32> to vector<8xf32>
    %10 = vector.shape_cast %9 : vector<8xf32> to vector<8x1xf32>
    %cst_4 = arith.constant 3.200000e+01 : f32
    %11 = vector.broadcast %cst_4 : f32 to vector<8x1xf32>
    %12 = arith.divf %10, %11 : vector<8x1xf32>
    %13 = vector.broadcast %5 : vector<8x1xf32> to vector<8x32xf32>
    %14 = arith.subf %1, %13 : vector<8x32xf32>
    %cst_5 = arith.constant 9.99999974E-6 : f32
    %15 = vector.broadcast %cst_5 : f32 to vector<8x1xf32>
    %16 = arith.addf %12, %15 : vector<8x1xf32>
    %17 = math.rsqrt %16 : vector<8x1xf32>
    %18 = vector.broadcast %17 : vector<8x1xf32> to vector<8x32xf32>
    %19 = arith.mulf %14, %18 : vector<8x32xf32>
    %20 = arith.truncf %19 : vector<8x32xf32> to vector<8x32xbf16>
    %c0_6 = arith.constant 0 : index
    %c0_7 = arith.constant 0 : index
    %21 = vector.load %arg3[%c0_6, %c0_7] : memref<32x32xbf16, #tpu.memory_space<vmem>>, vector<32x32xbf16>
    %cst_8 = arith.constant dense<0.000000e+00> : vector<8x32xf32>
    %22 = tpu.matmul %20, %21, %cst_8 {dimension_numbers = #tpu.dot_dimension_numbers<[1], [0], [0], [1], [0, 0, 1, 1], [], []>} : vector<8x32xbf16>, vector<32x32xbf16>, vector<8x32xf32> -> vector<8x32xf32>
    %cst_9 = arith.constant 6.250000e-02 : f32
    %23 = vector.broadcast %cst_9 : f32 to vector<8x32xf32>
    %24 = arith.mulf %22, %23 : vector<8x32xf32>
    %c0_10 = arith.constant 0 : index
    %c0_11 = arith.constant 0 : index
    %25 = vector.load %arg4[%c0_10, %c0_11] : memref<32x32xbf16, #tpu.memory_space<vmem>>, vector<32x32xbf16>
    %cst_12 = arith.constant dense<0.000000e+00> : vector<8x32xf32>
    %26 = tpu.matmul %20, %25, %cst_12 {dimension_numbers = #tpu.dot_dimension_numbers<[1], [0], [0], [1], [0, 0, 1, 1], [], []>} : vector<8x32xbf16>, vector<32x32xbf16>, vector<8x32xf32> -> vector<8x32xf32>
    %c0_13 = arith.constant 0 : index
    %c0_14 = arith.constant 0 : index
    %27 = vector.load %arg5[%c0_13, %c0_14] : memref<32x32xbf16, #tpu.memory_space<vmem>>, vector<32x32xbf16>
    %cst_15 = arith.constant dense<0.000000e+00> : vector<8x32xf32>
    %28 = tpu.matmul %20, %27, %cst_15 {dimension_numbers = #tpu.dot_dimension_numbers<[1], [0], [0], [1], [0, 0, 1, 1], [], []>} : vector<8x32xbf16>, vector<32x32xbf16>, vector<8x32xf32> -> vector<8x32xf32>
    %29 = arith.truncf %24 : vector<8x32xf32> to vector<8x32xbf16>
    %c0_16 = arith.constant 0 : index
    %c0_17 = arith.constant 0 : index
    %c0_18 = arith.constant 0 : index
    %30 = vector.load %arg6[%c0_16, %c0_17, %c0_18] : memref<1x8x32xbf16, #tpu.memory_space<vmem>>, vector<1x8x32xbf16>
    %31 = vector.shape_cast %30 : vector<1x8x32xbf16> to vector<8x32xbf16>
    %32 = vector.shape_cast %29 : vector<8x32xbf16> to vector<1x8x32xbf16>
    tpu.vector_store %arg6[%c0_16, %c0_17, %c0_18], %32 {strides = array<i32>} : memref<1x8x32xbf16, #tpu.memory_space<vmem>>, vector<1x8x32xbf16>,
    %33 = arith.truncf %26 : vector<8x32xf32> to vector<8x32xbf16>
    %c0_19 = arith.constant 0 : index
    %c0_20 = arith.constant 0 : index
    %c0_21 = arith.constant 0 : index
    %34 = vector.load %arg7[%c0_19, %c0_20, %c0_21] : memref<1x8x32xbf16, #tpu.memory_space<vmem>>, vector<1x8x32xbf16>
    %35 = vector.shape_cast %34 : vector<1x8x32xbf16> to vector<8x32xbf16>
    %36 = vector.shape_cast %33 : vector<8x32xbf16> to vector<1x8x32xbf16>
    tpu.vector_store %arg7[%c0_19, %c0_20, %c0_21], %36 {strides = array<i32>} : memref<1x8x32xbf16, #tpu.memory_space<vmem>>, vector<1x8x32xbf16>,
    %37 = arith.truncf %28 : vector<8x32xf32> to vector<8x32xbf16>
    %c0_22 = arith.constant 0 : index
    %c0_23 = arith.constant 0 : index
    %c0_24 = arith.constant 0 : index
    %38 = vector.load %arg8[%c0_22, %c0_23, %c0_24] : memref<1x8x32xbf16, #tpu.memory_space<vmem>>, vector<1x8x32xbf16>
    %39 = vector.shape_cast %38 : vector<1x8x32xbf16> to vector<8x32xbf16>
    %40 = vector.shape_cast %37 : vector<8x32xbf16> to vector<1x8x32xbf16>
    tpu.vector_store %arg8[%c0_22, %c0_23, %c0_24], %40 {strides = array<i32>} : memref<1x8x32xbf16, #tpu.memory_space<vmem>>, vector<1x8x32xbf16>,
    return
  }
  func.func @transform_0(%arg0: i32, %arg1: i32) -> (i32, i32, i32) {
    %c0_i32 = arith.constant 0 : i32
    %c0_i32_0 = arith.constant 0 : i32
    return %arg0, %arg1, %c0_i32 : i32, i32, i32
  }
  func.func @transform_1(%arg0: i32, %arg1: i32) -> (i32, i32) {
    %c0_i32 = arith.constant 0 : i32
    %c0_i32_0 = arith.constant 0 : i32
    %c0_i32_1 = arith.constant 0 : i32
    return %c0_i32, %c0_i32_0 : i32, i32
  }
  func.func @transform_2(%arg0: i32, %arg1: i32) -> (i32, i32) {
    %c0_i32 = arith.constant 0 : i32
    %c0_i32_0 = arith.constant 0 : i32
    %c0_i32_1 = arith.constant 0 : i32
    return %c0_i32, %c0_i32_0 : i32, i32
  }
  func.func @transform_3(%arg0: i32, %arg1: i32) -> (i32, i32) {
    %c0_i32 = arith.constant 0 : i32
    %c0_i32_0 = arith.constant 0 : i32
    %c0_i32_1 = arith.constant 0 : i32
    return %c0_i32, %c0_i32_0 : i32, i32
  }
  func.func @transform_4(%arg0: i32, %arg1: i32) -> (i32, i32, i32) {
    %c0_i32 = arith.constant 0 : i32
    %c0_i32_0 = arith.constant 0 : i32
    return %arg0, %arg1, %c0_i32 : i32, i32, i32
  }
  func.func @transform_5(%arg0: i32, %arg1: i32) -> (i32, i32, i32) {
    %c0_i32 = arith.constant 0 : i32
    %c0_i32_0 = arith.constant 0 : i32
    return %arg0, %arg1, %c0_i32 : i32, i32, i32
  }
  func.func @transform_6(%arg0: i32, %arg1: i32) -> (i32, i32, i32) {
    %c0_i32 = arith.constant 0 : i32
    %c0_i32_0 = arith.constant 0 : i32
    return %arg0, %arg1, %c0_i32 : i32, i32, i32
  }
}

</mosaic_0001>

<bundles_post_ra>
// kernel: tpu_custom_call.1
= control target key start
LH: loop header
LB: loop body
LE: loop exit
PB: predicated region body
PF: predicated region fallthrough
CT: control target
= control target key end

     0   :  { %s1515_s0 = inlined_call_operand.hbm [shape: f32[2,16,32], index: 0, kind: input, shape index: {}]   ;;  %s1516_s1 = inlined_call_operand.hbm [shape: bf16[32,32], index: 1, kind: input, shape index: {}]   ;;  %s1517_s2 = inlined_call_operand.hbm [shape: bf16[32,32], index: 2, kind: input, shape index: {}]   ;;  %s1518_s3 = inlined_call_operand.hbm [shape: bf16[32,32], index: 3, kind: input, shape index: {}]   ;;  %s1519_s4 = inlined_call_operand.hbm [shape: bf16[2,16,32], index: 4, kind: output, shape index: {0}]   ;;  %s1520_s5 = inlined_call_operand.hbm [shape: bf16[2,16,32], index: 5, kind: output, shape index: {1}]   ;;  %s1521_s6 = inlined_call_operand.hbm [shape: bf16[2,16,32], index: 6, kind: output, shape index: {2}]  }
   0x1   :  { %1528 = sst [smem:[#allocation23_spill]] %s1516_s1 }
   0x2   :  { %1529 = sst [smem:[#allocation24_spill]] %s1517_s2 }
   0x3   :  { %1530 = sst [smem:[#allocation25_spill]] %s1518_s3 }
   0x4   :  { %1531 = sst [smem:[#allocation26_spill]] %s1521_s6 }
   0x5   :  { %12 = vsyncpa [#allocation3], 0 }
   0x6   :  { %14 = vsyncpa [#allocation3 + $0x1], 0 }
   0x7   :  { %15 = vsyncpa [#allocation6], 0 }
   0x8   :  { %16 = vsyncpa [#allocation9], 0 }
   0x9   :  { %17 = vsyncpa [#allocation4], 0 }
   0xa   :  { %19 = vsyncpa [#allocation4 + $0x1], 0 }
   0xb   :  { %20 = vsyncpa [#allocation12], 0 }
   0xc   :  { %22 = vsyncpa [#allocation12 + $0x1], 0  ;;  %s1248_s21 = smov 0   ;;  %s1250_s22 = smov 0  }
   0xd   :  { %s1252_s23 = smov 0   ;;  %s1254_s24 = smov 0  }
   0xe   :  { %s1256_s25 = smov 0   ;;  %s1258_s26 = smov 0  }
   0xf   :  { %s1260_s27 = smov 0   ;;  %s1262_s28 = smov 0  }
  0x10 LB: > { %1532 = sst [smem:[#allocation19_spill]] %s1177_s21  ;;  %s1289_s29 = sadd.s32 4294967295, %s1205_s28   ;;  %s1205_s28 = sphi %s1262_s28, %s28_s28   ;;  %s1201_s27 = sphi %s1260_s27, %s1557_s27   ;;  %s1197_s26 = sphi %s1258_s26, %s1556_s26   ;;  %s1193_s25 = sphi %s1256_s25, %s1555_s25   ;;  %s1189_s24 = sphi %s1254_s24, %s1554_s24   ;;  %s1185_s23 = sphi %s1252_s23, %s1553_s23   ;;  %s1181_s22 = sphi %s1250_s22, %s1552_s22   ;;  %s1177_s21 = sphi %s1248_s21, %s1551_s21  }
  0x11   : > { %p733_p0 = scmp.ge.s32.totalorder %s1205_s28, 1  ;;  %p63_p1 = scmp.eq.s32.totalorder %s1289_s29, 0 }
  0x12   : > { %p220_p2 = scmp.lt.s32.totalorder %s1205_s28, 5  ;;  %s1533_s1 = sld [smem:[#allocation23_spill]] }
  0x13   : > { %s1207_s10 = smov [#allocation5]   ;;  %s1536_s2 = sld [smem:[#allocation24_spill]] }
  0x14   : > { %p1297_p3 = pnand %p733_p0, %p220_p2  ;;  %s233_s11 = sshll.u32 %s1207_s10, 4  ;;  %s234_s11 = int_to_ptr.vmem [resolvable:$true] %s233_s11 }
  0x15   : > { %s1208_s16 = smov 64   ;;  %s1209_s17 = smov 4  }
  0x16   : > { %p813_p4 = pneg %p1297_p3  ;;  %s1210_s18 = smov [#allocation7]  }
  0x17   : > { %s247_s19 = sshll.u32 %s1210_s18, 4  ;;  %s1537_s3 = sld [smem:[#allocation25_spill]]  ;;  %s248_s19 = int_to_ptr.vmem [resolvable:$true] %s247_s19 }
  0x18   : > { %s231_s8 = sshll.u32 %s1533_s1, 4  ;;  %p1305_p5 = pnand %p813_p4, %p63_p1  ;;  %s232_s8 = int_to_ptr.hbm [resolvable:$true] %s231_s8 }
  0x19   : > { %s245_s15 = sshll.u32 %s1536_s2, 4  ;;  %s1211_s10 = smov [#allocation8]   ;;  %s246_s15 = int_to_ptr.hbm [resolvable:$true] %s245_s15 }
  0x1a   : > { %816 = dma.hbm_to_vmem [thread:$0]  (!%p1305_p5), %s232_s8, 256, %s234_s11, [#allocation6], %s1208_s16, %s1208_s16, %s1209_s17  }
  0x1b   : > { %819 = dma.hbm_to_vmem [thread:$0]  (!%p1305_p5), %s246_s15, 256, %s248_s19, [#allocation6], %s1208_s16, %s1208_s16, %s1209_s17  }
  0x1c   : > { %s261_s13 = sshll.u32 %s1211_s10, 4  ;;  %s1522_s8 = sadd.s32 4294967294, %s1205_s28   ;;  %s262_s13 = int_to_ptr.vmem [resolvable:$true] %s261_s13 }
  0x1d   : > { %s259_s7 = sshll.u32 %s1537_s3, 4  ;;  %s37_s11 = sadd.s32 1, %s1197_s26  ;;  %s260_s7 = int_to_ptr.hbm [resolvable:$true] %s259_s7 }
  0x1e   : > { %822 = dma.hbm_to_vmem [thread:$0]  (!%p1305_p5), %s260_s7, 256, %s262_s13, [#allocation9], %s1208_s16, %s1208_s16, %s1209_s17  }
  0x1f   : > { %s40_s14 = sadd.s32 1, %s1201_s27  ;;  %p38_p6 = scmp.ge.s32.totalorder %s37_s11, 2 }
  0x20   : > { %s49_s18 = sadd.s32 1, %s1185_s23  ;;  %p56_p7 = scmp.ne.s32.totalorder %s1185_s23, %s1181_s22 }
  0x21   : > { %p57_p8 = scmp.eq.s32.totalorder %s1205_s28, 0  ;;  %s1559_s11 = smov (%p38_p6, %s37_s11), 0 }
  0x22   : > { %1538 = sst [smem:[#allocation20_spill]] %s1559_s11  ;;  %s1561_s14 = smov (!%p38_p6, %s40_s14), %s1201_s27 }
  0x23   : > { %s45_s15 = ssub.s32 %s1197_s26, %s1559_s11  ;;  %p1333_p9 = por %p57_p8, %p56_p7 }
  0x24   : > { %p42_p10 = scmp.ge.s32.totalorder %s1561_s14, 2  ;;  %p62_p11 = scmp.ne.s32.totalorder %s1181_s22, %s1177_s21 }
  0x25   : > { %p151_p12 = scmp.eq.s32.totalorder %s1289_s29, 3  ;;  %p157_p13 = scmp.eq.s32.totalorder %s1522_s8, 3 }
  0x26   : > { %s1563_s14 = smov (%p42_p10, %s1561_s14), 0  ;;  %p1346_p0 = por %p63_p1, %p62_p11 }
  0x27   : > { %1540 = sst [smem:[#allocation21_spill]] %s1563_s14  ;;  %p1350_p2 = por %p151_p12, %p56_p7 }
  0x28   : > { %s44_s19 = ssub.s32 %s1201_s27, %s1563_s14  ;;  %p1356_p4 = por %p157_p13, %p62_p11 }
  0x29   : > { %s46_s30 = sor.u32 %s45_s15, %s44_s19  ;;  %p840_p5 = scmp.lt.s32.totalorder %s1205_s28, 4 }
  0x2a   : > { %s1543_s20 = scalar_select %p1356_p4, 1, 0 }
  0x2b   : > { %p47_p6 = scmp.eq.s32.totalorder %s46_s30, 0  ;;  %s275_s7 = sand.u32 1, %s1185_s23  }
  0x2c   : > { %1544 = sst [smem:[#allocation22_spill]] %s1543_s20  ;;  %s738_s10 = sshll.u32 %s275_s7, 3 }
  0x2d   : > { %s1363_s13 = scalar_select %p47_p6, %s1185_s23, %s49_s18  }
  0x2e   : > { %s739_s8 = sshll.u32 %s1201_s27, 1  ;;  %s279_s2 = scalar_lea.vmem [#allocation2], %s738_s10 }
  0x2f   : > { %s283_s1 = sadd.s32 %s1197_s26, %s739_s8  ;;  %s289_s3 = sshll.u32 %s279_s2, 4  ;;  %s290_s3 = int_to_ptr.vmem [resolvable:$true] %s289_s3 }
  0x30   : > { %s740_s11 = sshll.u32 %s283_s1, 3  ;;  %p824_p7 = pnand %p840_p5, %p1333_p9 }
  0x31   : > { %s285_s14 = scalar_lea.hbm %s1515_s0, %s740_s11  ;;  %s276_s15 = scalar_lea.sflag [#allocation3], %s275_s7 }
  0x32   : > { %s287_s20 = sshll.u32 %s285_s14, 4  ;;  %298 = sbr.rel (%p1297_p3) target bundleno = 484 (0x1e4), region = 36  ;;  %s288_s20 = int_to_ptr.hbm [resolvable:$true] %s287_s20 }
  0x33   : > { %826 = dma.hbm_to_vmem [thread:$0]  (!%p824_p7), %s288_s20, 128, %s290_s3, %s276_s15  }
  0x34   : > { %s1375_s8 = sand.u32 (!%p1297_p3), 1, %s1181_s22  }
  0x35   : > { %s742_s1 = sshll.u32 (!%p1297_p3), %s1375_s8, 3  ;;  %s301_s2 = scalar_lea.sflag (!%p1297_p3), [#allocation3], %s1375_s8 }
  0x36   : > { %s304_s18 = scalar_lea.vmem (!%p1297_p3), [#allocation2], %s742_s1 }
  0x37   : > { %1156 = dma.done.wait (%p1346_p0), %s301_s2, 128  }
  0x38   : > { %1158 = vsyncadd (%p1346_p0), %s301_s2, 4294967168 }
  0x39   : > { %1160 = dma.done.wait (%p63_p1), [#allocation6], 512  }
  0x3a   : > { %1162 = vsyncadd (%p63_p1), [#allocation6], 4294966784 }
  0x3b   : > { %1164 = dma.done.wait (%p63_p1), [#allocation9], 256  }
  0x3c   : > { %1166 = vsyncadd (%p63_p1), [#allocation9], 4294967040  ;;  %vm361_vm0 = vcmask 261120   ;;  %v360_v0 = vld [vmem:[%s304_s18] sm:$0xff]  ;;  %v1212_v2 = vmov 32.0   ;;  %v788_v14 = vld [vmem:[#allocation5 + $0x8] sm:$0xff] }
  0x3d   : > { %v362_v1 = vsel %vm361_vm0, %v360_v0, 0.0  ;;  %915 = vrcp.f32 %v1212_v2  ;;  %v790_v15 = vld [vmem:[#allocation7 + $0x8] sm:$0xff]  ;;  %v792_v16 = vld [vmem:[#allocation8 + $0x8] sm:$0xff]  ;;  %417 = vmatpush.bf16.msra.mxu0 %v788_v14  ;;  %v787_v17 = vld [vmem:[#allocation5] sm:$0xff]  ;;  %s779_s3 = sshll.u32 %s1193_s25, 1  ;;  %s1401_s9 = sshll.u32 %s1375_s8, 2 }
  0x3e   : > { %363 = vadd.xlane.f32.xlu0 %v362_v1  ;;  %447 = vmatpush.bf16.msra.mxu1 %v790_v15  ;;  %v789_v18 = vld [vmem:[#allocation7] sm:$0xff]  ;;  %v791_v19 = vld [vmem:[#allocation8] sm:$0xff]  ;;  %s511_s6 = sadd.s32 %s1189_s24, %s779_s3  ;;  %s495_s16 = sand.u32 1, %s1289_s29   ;;  %vm484_vm5 = vcmask 257024  }
  0x3f   : > { %476 = vmatpush.bf16.msra.mxu2 %v792_v16  ;;  %s1398_s21 = sshll.u32 %s511_s6, 2  ;;  %s351_s19 = scalar_lea.vmem [#allocation11], %s1401_s9 }
  0x40   : > { %s529_s12 = scalar_lea.hbm %s1520_s5, %s1398_s21  ;;  %s1409_s20 = sshll.u32 %s351_s19, 4  ;;  %s532_s20 = int_to_ptr.vmem [resolvable:$true] %s1409_s20 }
  0x41   : > { %418 = vmatpush.bf16.msra.mxu0 %v787_v17  ;;  %s513_s30 = scalar_lea.hbm %s1519_s4, %s1398_s21  ;;  %s1415_s7 = sshll.u32 %s529_s12, 4  ;;  %s534_s7 = int_to_ptr.hbm [resolvable:$true] %s1415_s7 }
  0x42   : > { %448 = vmatpush.bf16.msra.mxu1 %v789_v18  ;;  %s344_s10 = scalar_lea.vmem [#allocation10], %s1401_s9  ;;  %s1423_s29 = sshll.u32 %s513_s30, 4  ;;  %s518_s29 = int_to_ptr.hbm [resolvable:$true] %s1423_s29 }
  0x43   : > { %v916_v3 = vpop.eup %915  ;;  %477 = vmatpush.bf16.msra.mxu2 %v791_v19  ;;  %s1420_s15 = sshll.u32 %s344_s10, 4  ;;  %s1545_s18 = sld [smem:[#allocation26_spill]]  ;;  %s516_s15 = int_to_ptr.vmem [resolvable:$true] %s1420_s15 }
  0x44   : > { %v366_v4 = vmul.f32 32.0, %v916_v3  ;;  %vm370_vm1 = vweird.f32 %v916_v3  ;;  %s1433_s6 = scalar_lea.sflag [#allocation12], %s495_s16  ;;  %s1053_s11 = sshra.s32 %s534_s7, 4  ;;  %s1054_s11 = int_to_ptr.hbm [resolvable:$true] %s1053_s11 }
  0x45   : > { %s1055_s14 = scalar_lea.hbm %s1054_s11, 4  ;;  %s1059_s24 = scalar_lea.hbm %s1520_s5, 16 }
  0x46   : > { %v367_v5 = vsub.f32 1.0, %v366_v4  ;;  %p1056_p1 = scmp.ne.s32.totalorder %s1054_s11, %s1055_s14  ;;  %p1060_p9 = scmp.lt.s32.totalorder %s1054_s11, %s1520_s5 }
  0x47   : > { %p1061_p10 = scmp.lt.s32.totalorder %s1059_s24, %s1055_s14 }
  0x48   : > { %v368_v6 = vmul.f32 %v916_v3, %v367_v5  ;;  %p1057_p3 = pnand %p1056_p1, %p1350_p2 }
  0x49   : > { %s545_s3 = scalar_lea.hbm %s1545_s18, %s1398_s21  ;;  %p1062_p11 = por %p1061_p10, %p1060_p9 }
  0x4a   : > { %v369_v7 = vadd.f32 %v916_v3, %v368_v6  ;;  %p1058_p8 = pneg %p1057_p3 }
  0x4c   : > { %v371_v8 = vsel %vm370_vm1, %v916_v3, %v369_v7  ;;  %p1063_p12 = pnand %p1062_p11, %p1058_p8 }
  0xb1   : > { %v364_v9 = vpop.xlane.xlu0 %363 }
  0xb2   : > { %v372_v10 = vmul.f32 %v371_v8, %v364_v9 }
  0xb4   : > { %v373_v11 = vsub.f32 %v360_v0, %v372_v10 }
  0xb6   : > { %v374_v12 = vmul.f32 %v373_v11, %v373_v11 }
  0xb8   : > { %v375_v13 = vsel %vm361_vm0, %v374_v12, 0.0 }
  0xb9   : > { %376 = vadd.xlane.f32.xlu0 %v375_v13 }
 0x12c   : > { %v377_v20 = vpop.xlane.xlu0 %376 }
 0x12d   : > { %v378_v21 = vmul.f32 %v377_v20, %v371_v8 }
 0x12f   : > { %v379_v22 = vadd.f32 1e-05, %v378_v21 }
 0x131   : > { %917 = vrsqrt.f32 %v379_v22  ;;  %vm386_vm3 = vweird.f32 %v379_v22 }
 0x137   : > { %v918_v23 = vpop.eup %917 }
 0x138   : > { %v381_v24 = vmul.f32 %v918_v23, %v379_v22  ;;  %vm387_vm2 = vweird.f32 %v918_v23 }
 0x139   : > { %vm388_vm4 = vmor %vm386_vm3, %vm387_vm2 }
 0x13a   : > { %v382_v25 = vmul.f32 %v918_v23, %v381_v24 }
 0x13c   : > { %v383_v26 = vmul.f32 0.5, %v382_v25 }
 0x13e   : > { %v384_v27 = vsub.f32 1.5, %v383_v26 }
 0x140   : > { %v385_v28 = vmul.f32 %v918_v23, %v384_v27 }
 0x142   : > { %v389_v29 = vsel %vm388_vm4, %v918_v23, %v385_v28 }
 0x143   : > { %v390_v30 = vmul.f32 %v389_v29, %v373_v11 }
 0x145   : > { %v391_v31 = vpack.c.bf16 %v390_v30, %v390_v30 }
 0x147   : > { %757 = vmatmul.msk.bf16.vlgmr.msra.gmra.mxu0 %vm361_vm0, %v391_v31  ;;  %766 = vmatmul.msk.bf16.vlgmr.msra.gmra.mxu1 %vm361_vm0, %v391_v31 }
 0x148   : > { %775 = vmatmul.msk.bf16.vlgmr.msra.gmra.mxu2 %vm361_vm0, %v391_v31 }
 0x1c4   : > { %v420_v32 = vpop.f32.mrf.mxu0  ;;  %v450_v33 = vpop.f32.mrf.mxu1 }
 0x1c5   : > { %v424_v34 = vmul.f32 0.0625, %v420_v32  ;;  %v486_v35 = vpack.c.bf16 %v450_v33, %v450_v33 }
 0x1c7   : > { %v483_v36 = vpack.c.bf16 %v424_v34, %v424_v34  ;;  %487 = vst.msk [vmem:[%s351_s19] sm:$0xf] %vm484_vm5, %v486_v35 }
 0x1c8   : > { %1066 = shalt.err (!%p1063_p12)
}
 0x1c9   : > { %808 = dma.vmem_to_hbm [thread:$0]  (%p1350_p2), %s532_s20, 64, %s534_s7, %s1433_s6   ;;  %485 = vst.msk [vmem:[%s344_s10] sm:$0xf] %vm484_vm5, %v483_v36 }
 0x1ca   : > { %s358_s21 = scalar_lea.vmem [#allocation13], %s1401_s9  ;;  %s1452_s19 = sshll.u32 %s545_s3, 4  ;;  %s550_s19 = int_to_ptr.hbm [resolvable:$true] %s1452_s19 }
 0x1cb   : > { %s1450_s16 = sshll.u32 %s358_s21, 4  ;;  %s491_s2 = scalar_lea.sflag [#allocation4], %s1375_s8  ;;  %s548_s16 = int_to_ptr.vmem [resolvable:$true] %s1450_s16 }
 0x1cc   : > { %s1081_s11 = sshra.s32 %s518_s29, 4  ;;  %s1087_s20 = scalar_lea.hbm %s1519_s4, 16  ;;  %s1082_s11 = int_to_ptr.hbm [resolvable:$true] %s1081_s11 }
 0x1cd   : > { %s1083_s14 = scalar_lea.hbm %s1082_s11, 4  ;;  %p1088_p6 = scmp.lt.s32.totalorder %s1082_s11, %s1519_s4 }
 0x1ce   : > { %p1084_p13 = scmp.ne.s32.totalorder %s1082_s11, %s1083_s14  ;;  %p1089_p7 = scmp.lt.s32.totalorder %s1087_s20, %s1083_s14 }
 0x1d0   : > { %p1085_p0 = pnand %p1084_p13, %p1350_p2  ;;  %p1090_p1 = por %p1089_p7, %p1088_p6 }
 0x1d2   : > { %p1086_p5 = pneg %p1085_p0 }
 0x1d4   : > { %p1091_p3 = pnand %p1090_p1, %p1086_p5 }
 0x1d6   : > { %1094 = shalt.err (!%p1091_p3)
}
 0x1d7   : > { %807 = dma.vmem_to_hbm [thread:$0]  (%p1350_p2), %s516_s15, 64, %s518_s29, %s491_s2   ;;  %v479_v37 = vpop.f32.mrf.mxu2  ;;  %v422_v39 = vpop.f32.mrf.mxu0 }
 0x1d8   : > { %v488_v38 = vpack.c.bf16 %v479_v37, %v479_v37  ;;  %v452_v40 = vpop.f32.mrf.mxu1  ;;  %s1109_s8 = sshra.s32 %s550_s19, 4  ;;  %s1115_s30 = scalar_lea.hbm %s1545_s18, 16  ;;  %s1110_s8 = int_to_ptr.hbm [resolvable:$true] %s1109_s8 }
 0x1d9   : > { %s1111_s9 = scalar_lea.hbm %s1110_s8, 4  ;;  %p1116_p11 = scmp.lt.s32.totalorder %s1110_s8, %s1545_s18 }
 0x1da   : > { %489 = vst.msk [vmem:[%s358_s21] sm:$0xf] %vm484_vm5, %v488_v38  ;;  %p1112_p8 = scmp.ne.s32.totalorder %s1110_s8, %s1111_s9  ;;  %p1117_p12 = scmp.lt.s32.totalorder %s1115_s30, %s1111_s9 }
 0x1dc   : > { %p1113_p9 = pnand %p1112_p8, %p1350_p2  ;;  %p1118_p13 = por %p1117_p12, %p1116_p11 }
 0x1de   : > { %p1114_p10 = pneg %p1113_p9 }
 0x1e0   : > { %p1119_p0 = pnand %p1118_p13, %p1114_p10 }
 0x1e2   : > { %1122 = shalt.err (!%p1119_p0)
}
 0x1e3   : > { %809 = dma.vmem_to_hbm [thread:$0]  (%p1350_p2), %s548_s16, 64, %s550_s19, %s1433_s6   ;;  %v481_v41 = vpop.f32.mrf.mxu2 }
 0x1e4 PF: > { %s1546_s1 = sld [smem:[#allocation19_spill]]  ;;  %p844_p5 = scmp.ge.s32.totalorder %s1205_s28, 2 }
 0x1e6   : > { %p828_p6 = pnand %p844_p5, %p1356_p4 }
 0x1e8   : > { %p829_p7 = pneg %p828_p6 }
 0x1ea   : > { %s561_s2 = sand.u32 1, %s1546_s1  }
 0x1eb   : > { %s562_s11 = scalar_lea.sflag [#allocation4], %s561_s2 }
 0x1ec   : > { %1168 = dma.done.wait (%p829_p7), %s562_s11, 64  }
 0x1ed   : > { %1170 = vsyncadd (%p829_p7), %s562_s11, 4294967232  ;;  %s1548_s14 = sadd.s32 4294967294, %s1205_s28  }
 0x1ee   : > { %s571_s12 = sand.u32 1, %s1548_s14  }
 0x1ef   : > { %s572_s25 = scalar_lea.sflag [#allocation12], %s571_s12 }
 0x1f0   : > { %1172 = dma.done.wait (%p829_p7), %s572_s25, 128  }
 0x1f1   : > { %1174 = vsyncadd (%p829_p7), %s572_s25, 4294967168  ;;  %s28_s28 = sadd.s32 1, %s1205_s28   ;;  %s1549_s17 = sld [smem:[#allocation20_spill]] }
 0x1f2   : > { %p25_p2 = scmp.ge.s32.totalorder %s28_s28, 6   ;;  %s1550_s6 = sld [smem:[#allocation21_spill]] }
 0x1f3   : > { %s1551_s21 = smov %s1181_s22  ;;  %s1552_s22 = smov %s1185_s23 }
 0x1f4   : > { %s1553_s23 = smov %s1363_s13  ;;  %s1554_s24 = smov %s1197_s26 }
 0x1f5   : > { %s1555_s25 = smov %s1201_s27  ;;  %27 = sbr.rel (!%p25_p2) target bundleno = 16 (0x10), region = 125 }
 0x1f7   : > { %s1556_s26 = smov %s1549_s17 }
 0x1f8   : > { %s1557_s27 = smov %s1550_s6 }
 0x1fa   :  { %588 = vsyncpa [#allocation3], 1 }
 0x1fb   :  { %590 = vsyncpa [#allocation3 + $0x1], 1 }
 0x1fc   :  { %591 = vsyncpa [#allocation6], 1 }
 0x1fd   :  { %592 = vsyncpa [#allocation9], 1 }
 0x1fe   :  { %593 = vsyncpa [#allocation4], 1 }
 0x1ff   :  { %595 = vsyncpa [#allocation4 + $0x1], 1 }
 0x200   :  { %596 = vsyncpa [#allocation12], 1 }
 0x201   :  { %598 = vsyncpa [#allocation12 + $0x1], 1 }

</bundles_post_ra>
